<compile_context>
chip_gen: v7x
topology: tpu7x:2x2x1
jax: 0.10.0
libtpu: 0.0.40
codegen_flags: <defaults>
</compile_context>

<pallas_src>
import functools

import jax
import jax.numpy as jnp
from jax.experimental import pallas as pl
from jax.experimental.pallas import tpu as pltpu


def _l2norm_row_kernel(x_ref, o_ref, *, eps):
    """Per-row L2 normalize; reduction over the (full-width) last axis."""
    x = x_ref[...]
    # Accumulate sum of squares in f32 (no full upcast copy kept live for the store).
    ss = jnp.sum(jnp.square(x.astype(jnp.float32)), axis=-1, keepdims=True)
    # x / max(||x||, eps) == x * rsqrt(max(||x||^2, eps^2)).
    # eps^2 = 1e-24 is still a normal f32; this rewrite breaks only for eps <~ 1e-19.
    inv = jax.lax.rsqrt(jnp.maximum(ss, jnp.float32(eps) ** 2))
    o_ref[...] = (x * inv.astype(x.dtype)).astype(o_ref.dtype)


def _l2norm_packed_kernel(x_ref, seg_ref, o_ref, *, eps):
    """Lane-dense path for H < 128: each 128-lane row holds `pack` logical rows
    of length H. seg_ref is a (128, 128) block-diagonal ones matrix; sq @ seg
    computes the per-segment sum of squares broadcast to every lane of the segment.
    HIGHEST precision keeps the f32 reduction exact enough (no bf16 demotion)."""
    x = x_ref[...]
    sq = jnp.square(x.astype(jnp.float32))
    seg_sum = jax.lax.dot_general(
        sq, seg_ref[...],
        dimension_numbers=(((1,), (0,)), ((), ())),
        precision=jax.lax.Precision.HIGHEST,
        preferred_element_type=jnp.float32,
    )
    inv = jax.lax.rsqrt(jnp.maximum(seg_sum, jnp.float32(eps) ** 2))
    o_ref[...] = (x * inv.astype(x.dtype)).astype(o_ref.dtype)


def _sublane_multiple(dtype) -> int:
    # Sublane packing: 8 rows for 4-byte dtypes, 16 for 2-byte, 32 for 1-byte.
    return max(8, 32 // jnp.dtype(dtype).itemsize)


def l2norm_pallas(x, dim=-1, eps=1e-12):
    ndim = x.ndim
    axis = dim if dim >= 0 else dim + ndim
    if axis != ndim - 1:
        # Normalize over a non-trailing axis by moving it last (outside the kernel).
        x_last = jnp.moveaxis(x, axis, -1)
        return jnp.moveaxis(l2norm_pallas(x_last, dim=-1, eps=eps), -1, axis)

    orig_shape = x.shape
    H = orig_shape[-1]
    dtype = x.dtype
    itemsize = jnp.dtype(dtype).itemsize
    x2d = x.reshape(-1, H)          # reshape of contiguous array: free, no HBM pass
    R = x2d.shape[0]

    # Lane-dense packing for small hidden sizes: H < 128 -> pack 128 // H logical
    # rows per 128-lane vreg row so loads/stores are unmasked and full-bandwidth.
    pack = 1
    if H < 128 and 128 % H == 0 and R % (128 // H) == 0:
        pack = 128 // H
    W = H * pack
    Rp = R // pack
    xk = x2d.reshape(Rp, W)

    # Tile sizing: ~2 MiB input blocks (op is HBM-bandwidth bound). Keeps
    # double-buffered in + out well inside scoped VMEM on v5e/v6e/v7x while
    # leaving many grid steps to feed both v7x TensorCores.
    sub = _sublane_multiple(dtype)
    target_block_bytes = 2 * 1024 * 1024
    tile_rows = max(sub, (target_block_bytes // max(W * itemsize, 1)) // sub * sub)
    tile_rows = min(tile_rows, 2048)
    if tile_rows >= Rp:
        tile_rows = Rp              # single block: block dim == array dim is legal
    grid = pl.cdiv(Rp, tile_rows)
    # If tile_rows does not divide Rp, the ragged last block reads undefined tail
    # rows; the reduction is per-row/per-segment, so only those tail rows' outputs
    # are garbage and Pallas masks their write-back (never stored to HBM).

    if pack > 1:
        # (W, W) block-diagonal ones: seg[i, j] = 1 iff i // H == j // H.
        seg = jnp.kron(jnp.eye(pack, dtype=jnp.float32),
                       jnp.ones((H, H), dtype=jnp.float32))
        kernel = functools.partial(_l2norm_packed_kernel, eps=eps)
        in_specs = [
            pl.BlockSpec((tile_rows, W), lambda i: (i, 0)),
            pl.BlockSpec((W, W), lambda i: (0, 0)),   # constant block: DMA'd once
        ]
        operands = (xk, seg)
    else:
        kernel = functools.partial(_l2norm_row_kernel, eps=eps)
        in_specs = [pl.BlockSpec((tile_rows, W), lambda i: (i, 0))]
        operands = (xk,)

    out = pl.pallas_call(
        kernel,
        out_shape=jax.ShapeDtypeStruct((Rp, W), dtype),
        grid_spec=pltpu.PrefetchScalarGridSpec(
            num_scalar_prefetch=0,
            grid=(grid,),
            in_specs=in_specs,
            out_specs=pl.BlockSpec((tile_rows, W), lambda i: (i, 0)),
        ),
        compiler_params=pltpu.CompilerParams(
            dimension_semantics=("parallel",),
            vmem_limit_bytes=32 * 1024 * 1024,
        ),
        cost_estimate=pl.CostEstimate(
            flops=3 * R * H,
            transcendentals=R,
            bytes_accessed=2 * R * H * itemsize,
        ),
    )(*operands)

    return out.reshape(orig_shape)


def l2norm_ref(x, dim=-1, eps=1e-12):
    n = jnp.sqrt(jnp.sum(jnp.square(x.astype(jnp.float32)), axis=dim, keepdims=True))
    return (x.astype(jnp.float32) / jnp.maximum(n, eps)).astype(x.dtype)


if __name__ == "__main__":
    key = jax.random.PRNGKey(0)
    # Small shape consistent with the module: batch=2, seq=8, hidden=32.
    x = jax.random.normal(key, (2, 8, 32), dtype=jnp.float32)

    y = l2norm_pallas(x)               # exercises the lane-dense packed path (H=32)
    jax.block_until_ready(y)
    y_ref = l2norm_ref(x)
    assert y.shape == x.shape and y.dtype == x.dtype
    assert jnp.allclose(y, y_ref, atol=1e-5, rtol=1e-5)

    # Also exercise the full-width row path (H >= 128).
    x2 = jax.random.normal(jax.random.PRNGKey(1), (4, 3, 256), dtype=jnp.float32)
    y2 = l2norm_pallas(x2)
    jax.block_until_ready(y2)
    assert jnp.allclose(y2, l2norm_ref(x2), atol=1e-5, rtol=1e-5)

    print("KERNEL_OK")
</pallas_src>

<mosaic_0001>
module attributes {stable_mosaic.version = 11 : i64} {
  func.func @_l2norm_packed_kernel(%arg0: i32, %arg1: memref<4x128xf32, #tpu.memory_space<vmem>>, %arg2: memref<128x128xf32, #tpu.memory_space<vmem>>, %arg3: memref<4x128xf32, #tpu.memory_space<vmem>>) attributes {dimension_semantics = [#tpu.dimension_semantics<parallel>], iteration_bounds = array<i64: 1>, scalar_prefetch = 0 : i64, scratch_operands = 0 : i64, tpu.core_type = #tpu.core_type<tc>, window_params = [{transform_indices = @transform_0, window_bounds = array<i64: 4, 128>}, {pipeline_mode = #tpu.pipeline_mode<synchronous>, transform_indices = @transform_1, window_bounds = array<i64: 128, 128>}, {transform_indices = @transform_2, window_bounds = array<i64: 4, 128>}]} {
    %c0 = arith.constant 0 : index
    %c0_0 = arith.constant 0 : index
    %0 = vector.load %arg1[%c0, %c0_0] : memref<4x128xf32, #tpu.memory_space<vmem>>, vector<4x128xf32>
    %1 = arith.mulf %0, %0 : vector<4x128xf32>
    %c0_1 = arith.constant 0 : index
    %c0_2 = arith.constant 0 : index
    %2 = vector.load %arg2[%c0_1, %c0_2] : memref<128x128xf32, #tpu.memory_space<vmem>>, vector<128x128xf32>
    %cst = arith.constant dense<0.000000e+00> : vector<4x128xf32>
    %3 = tpu.matmul %1, %2, %cst {dimension_numbers = #tpu.dot_dimension_numbers<[1], [0], [0], [1], [0, 0, 1, 1], [], []>, precision = #tpu.contract_precision<fp32>} : vector<4x128xf32>, vector<128x128xf32>, vector<4x128xf32> -> vector<4x128xf32>
    %cst_3 = arith.constant 9.99999996E-13 : f32
    %4 = arith.mulf %cst_3, %cst_3 : f32
    %5 = vector.broadcast %4 : f32 to vector<4x128xf32>
    %6 = arith.maximumf %3, %5 : vector<4x128xf32>
    %7 = math.rsqrt %6 : vector<4x128xf32>
    %8 = arith.mulf %0, %7 : vector<4x128xf32>
    %c0_4 = arith.constant 0 : index
    %c0_5 = arith.constant 0 : index
    %9 = vector.load %arg3[%c0_4, %c0_5] : memref<4x128xf32, #tpu.memory_space<vmem>>, vector<4x128xf32>
    tpu.vector_store %arg3[%c0_4, %c0_5], %8 {strides = array<i32>} : memref<4x128xf32, #tpu.memory_space<vmem>>, vector<4x128xf32>,
    return
  }
  func.func @transform_0(%arg0: i32) -> (i32, i32) {
    %c0_i32 = arith.constant 0 : i32
    %c0_i32_0 = arith.constant 0 : i32
    return %arg0, %c0_i32 : i32, i32
  }
  func.func @transform_1(%arg0: i32) -> (i32, i32) {
    %c0_i32 = arith.constant 0 : i32
    %c0_i32_0 = arith.constant 0 : i32
    %c0_i32_1 = arith.constant 0 : i32
    return %c0_i32, %c0_i32_0 : i32, i32
  }
  func.func @transform_2(%arg0: i32) -> (i32, i32) {
    %c0_i32 = arith.constant 0 : i32
    %c0_i32_0 = arith.constant 0 : i32
    return %arg0, %c0_i32 : i32, i32
  }
}

</mosaic_0001>

<bundles_post_ra>
// kernel: tpu_custom_call.1
= control target key start
LH: loop header
LB: loop body
LE: loop exit
PB: predicated region body
PF: predicated region fallthrough
CT: control target
= control target key end

     0   :  { %7 = vsyncpa [#allocation3], 0  ;;  %s1582_s0 = inlined_call_operand.hbm [shape: f32[4,128], index: 0, kind: input, shape index: {}]   ;;  %s1583_s1 = inlined_call_operand.hbm [shape: f32[128,128], index: 1, kind: input, shape index: {}]   ;;  %s1584_s2 = inlined_call_operand.hbm [shape: f32[4,128], index: 2, kind: output, shape index: {}]  }
   0x1   :  { %8 = vsyncpa [#allocation6], 0 }
   0x2   :  { %9 = vsyncpa [#allocation4], 0  ;;  %s1264_s9 = smov [#allocation2]   ;;  %s1265_s11 = smov [#allocation5]  }
   0x3   :  { %s16_s10 = sshll.u32 %s1264_s9, 4  ;;  %s25_s12 = sshll.u32 %s1265_s11, 4  ;;  %s17_s10 = int_to_ptr.vmem [resolvable:$true] %s16_s10  ;;  %s1287_s12 = int_to_ptr.vmem [resolvable:$true] %s25_s12 }
   0x4   :  { %s1192_s15 = scalar_lea.hbm %s1582_s0, 64 }
   0x5   :  { %p1193_p0 = scmp.ne.s32.totalorder %s1582_s0, %s1192_s15  ;;  %p1196_p1 = scmp.lt.u32.totalorder %s1192_s15, %s1582_s0 }
   0x7   :  { %p1198_p2 = pnand %p1196_p1, %p1193_p0 }
   0x9   :  { %1201 = shalt.err (!%p1198_p2)
}
   0xa   :  { %s1202_s20 = scalar_lea.vmem %s17_s10, 64  ;;  %p1207_p4 = scmp.lt.s32.totalorder %s17_s10, %s17_s10 }
   0xb   :  { %p1203_p3 = scmp.ne.s32.totalorder %s17_s10, %s1202_s20  ;;  %p1208_p5 = scmp.lt.s32.totalorder %s1202_s20, %s1202_s20 }
   0xd   :  { %p1209_p6 = por %p1208_p5, %p1207_p4 }
   0xf   :  { %p1210_p7 = pnand %p1209_p6, %p1203_p3 }
  0x11   :  { %1213 = shalt.err (!%p1210_p7)
}
  0x12   :  { %19 = dma.hbm_to_vmem [thread:$0]  %s1582_s0, 64, %s17_s10, [#allocation3]  }
  0x13   :  { %s1214_s25 = scalar_lea.hbm %s1583_s1, 2048 }
  0x14   :  { %p1215_p8 = scmp.ne.s32.totalorder %s1583_s1, %s1214_s25  ;;  %p1218_p9 = scmp.lt.u32.totalorder %s1214_s25, %s1583_s1 }
  0x16   :  { %p1220_p10 = pnand %p1218_p9, %p1215_p8 }
  0x18   :  { %1223 = shalt.err (!%p1220_p10)
}
  0x19   :  { %s1224_s30 = scalar_lea.vmem %s1287_s12, 2048  ;;  %p1229_p12 = scmp.lt.s32.totalorder %s1287_s12, %s1287_s12 }
  0x1a   :  { %p1225_p11 = scmp.ne.s32.totalorder %s1287_s12, %s1224_s30  ;;  %p1230_p13 = scmp.lt.s32.totalorder %s1224_s30, %s1224_s30 }
  0x1c   :  { %p1231_p0 = por %p1230_p13, %p1229_p12 }
  0x1e   :  { %p1232_p1 = pnand %p1231_p0, %p1225_p11 }
  0x20   :  { %1235 = shalt.err (!%p1232_p1)
}
  0x21   :  { %s1266_s0 = smov 128   ;;  %s1267_s3 = smov 8  }
  0x22   :  { %31 = dma.hbm_to_vmem [thread:$0]  %s1583_s1, 2048, %s1287_s12, [#allocation6], %s1266_s0, %s1266_s0, %s1267_s3  }
  0x23   :  { %1258 = dma.done.wait [#allocation3], 64  }
  0x24   :  { %1259 = vsyncadd [#allocation3], 4294967232 }
  0x25   :  { %1260 = dma.done.wait [#allocation6], 2048  }
  0x26   :  { %1261 = vsyncadd [#allocation6], 4294965248  ;;  %v1268_v0 = vmov 0.0|0.0   ;;  %vm1269_vm0 = vmmov 0   ;;  %v1270_v1 = vmov 0.0   ;;  %v40_v2 = vld [vmem:[#allocation5] sm:$0xff] }
  0x27   :  { %1029 = vmatprep.subr.bf16.mxu1 %v1268_v0  ;;  %1101 = vmatprep.subr.bf16.mxu0 %v1268_v0  ;;  %v41_v3 = vld [vmem:[#allocation5 + $0x8] sm:$0xff]  ;;  %v42_v4 = vld [vmem:[#allocation5 + $0x10] sm:$0xff]  ;;  %v57_v5 = vand.u32 4294901760, %v40_v2  ;;  %v43_v7 = vld [vmem:[#allocation5 + $0x18] sm:$0xff]  ;;  %s1271_s1 = smov [#allocation7]  }
  0x28   :  { %851 = vmatprep.mubr.msk.f32.mxu1 %vm1269_vm0, %v1270_v1  ;;  %956 = vmatprep.mubr.msk.f32.mxu0 %vm1269_vm0, %v1270_v1  ;;  %v60_v6 = vand.u32 4294901760, %v41_v3  ;;  %v63_v8 = vand.u32 4294901760, %v42_v4  ;;  %v66_v9 = vand.u32 4294901760, %v43_v7  ;;  %v44_v10 = vld [vmem:[#allocation5 + $0x20] sm:$0xff]  ;;  %v45_v11 = vld [vmem:[#allocation5 + $0x28] sm:$0xff]  ;;  %v46_v16 = vld [vmem:[#allocation5 + $0x30] sm:$0xff] }
  0x29   :  { %v69_v14 = vand.u32 4294901760, %v44_v10  ;;  %v72_v15 = vand.u32 4294901760, %v45_v11  ;;  %v47_v17 = vld [vmem:[#allocation5 + $0x38] sm:$0xff]  ;;  %v75_v19 = vand.u32 4294901760, %v46_v16  ;;  %v1340_v22 = vld [vmem:[#allocation5 + $0x40] sm:$0xff]  ;;  %v1342_v23 = vld [vmem:[#allocation5 + $0x48] sm:$0xff]  ;;  %v1358_v30 = vsub.f32 %v40_v2, %v57_v5 }
  0x2a   :  { %v1324_v12 = vpack.c.bf16 %v60_v6, %v57_v5  ;;  %v1328_v13 = vpack.c.bf16 %v66_v9, %v63_v8  ;;  %v78_v20 = vand.u32 4294901760, %v47_v17  ;;  %v1336_v21 = vld [vmem:[#allocation2] sm:$0xf]  ;;  %v81_v26 = vand.u32 4294901760, %v1340_v22  ;;  %v1354_v28 = vld [vmem:[#allocation5 + $0x50] sm:$0xff]  ;;  %v1370_v36 = vld [vmem:[#allocation5 + $0x60] sm:$0xff] }
  0x2b   :  { %v1334_v18 = vpack.c.bf16 %v72_v15, %v69_v14  ;;  %v39_v24 = vmul.f32 %v1336_v21, %v1336_v21  ;;  %v84_v27 = vand.u32 4294901760, %v1342_v23  ;;  %v1356_v29 = vld [vmem:[#allocation5 + $0x58] sm:$0xff]  ;;  %v1362_v32 = vsub.f32 %v41_v3, %v60_v6  ;;  %v1374_v37 = vld [vmem:[#allocation5 + $0x68] sm:$0xff]  ;;  %v1393_v44 = vld [vmem:[#allocation5 + $0x70] sm:$0xff]  ;;  %s707_s6 = sshll.u32 %s1271_s1, 4  ;;  %s708_s6 = int_to_ptr.vmem [resolvable:$true] %s707_s6 }
  0x2c   :  { %1031 = vmatpush3.bf16.msra.mxu1 %v1324_v12  ;;  %1103 = vmatpush3.bf16.msra.mxu0 %v1324_v12  ;;  %v1348_v25 = vpack.c.bf16 %v78_v20, %v75_v19  ;;  %v87_v34 = vand.u32 4294901760, %v1354_v28  ;;  %v90_v35 = vand.u32 4294901760, %v1356_v29  ;;  %v1376_v38 = vsub.f32 %v42_v4, %v63_v8  ;;  %v1395_v45 = vld [vmem:[#allocation5 + $0x78] sm:$0xff]  ;;  %s1236_s7 = scalar_lea.vmem %s708_s6, 64  ;;  %p1241_p3 = scmp.lt.s32.totalorder %s708_s6, %s708_s6 }
  0x2d   :  { %1032 = vmatprep.subr.bf16.mxu1 %v1268_v0  ;;  %1104 = vmatprep.subr.bf16.mxu0 %v1268_v0  ;;  %v1360_v31 = vand.u32 4294901760, %v39_v24  ;;  %v1366_v33 = vpack.c.bf16 %v84_v27, %v81_v26  ;;  %v1378_v39 = vsub.f32 %v43_v7, %v66_v9  ;;  %v93_v40 = vand.u32 4294901760, %v1370_v36  ;;  %p1237_p2 = scmp.ne.s32.totalorder %s708_s6, %s1236_s7  ;;  %p1242_p4 = scmp.lt.s32.totalorder %s1236_s7, %s1236_s7 }
  0x2e   :  { %v1390_v42 = vpack.c.bf16 %v90_v35, %v87_v34  ;;  %v96_v43 = vand.u32 4294901760, %v1374_v37  ;;  %v150_v46 = vand.u32 4294901760, %v1358_v30  ;;  %v157_v47 = vand.u32 4294901760, %v1362_v32 }
  0x2f   :  { %v1382_v41 = vsub.f32 %v39_v24, %v1360_v31  ;;  %v1401_v48 = vsub.f32 %v44_v10, %v69_v14  ;;  %v1403_v49 = vsub.f32 %v45_v11, %v72_v15  ;;  %v99_v50 = vand.u32 4294901760, %v1393_v44  ;;  %p1243_p5 = por %p1242_p4, %p1241_p3 }
  0x30   :  { %1034 = vmatpush3.bf16.msra.mxu1 %v1328_v13  ;;  %1106 = vmatpush3.bf16.msra.mxu0 %v1328_v13  ;;  %v102_v51 = vand.u32 4294901760, %v1395_v45  ;;  %v164_v53 = vand.u32 4294901760, %v1376_v38  ;;  %v1415_v54 = vpack.c.bf16 %v96_v43, %v93_v40  ;;  %v151_v55 = vsub.f32 %v1358_v30, %v150_v46 }
  0x31   :  { %1035 = vmatprep.subr.bf16.mxu1 %v1268_v0  ;;  %1107 = vmatprep.subr.bf16.mxu0 %v1268_v0  ;;  %v139_v52 = vand.u32 4294901760, %v1382_v41  ;;  %v158_v56 = vsub.f32 %v1362_v32, %v157_v47  ;;  %v171_v57 = vand.u32 4294901760, %v1378_v39  ;;  %v1422_v58 = vsub.f32 %v46_v16, %v75_v19  ;;  %p1244_p6 = pnand %p1243_p5, %p1237_p2 }
  0x32   :  { %v1424_v59 = vsub.f32 %v47_v17, %v78_v20  ;;  %v165_v61 = vsub.f32 %v1376_v38, %v164_v53  ;;  %v178_v62 = vand.u32 4294901760, %v1401_v48  ;;  %v185_v63 = vand.u32 4294901760, %v1403_v49 }
  0x33   :  { %v140_v60 = vsub.f32 %v1382_v41, %v139_v52  ;;  %v1436_v2 = vpack.c.bf16 %v102_v51, %v99_v50  ;;  %v152_v3 = vand.u32 4294901760, %v151_v55  ;;  %v159_v4 = vand.u32 4294901760, %v158_v56 }
  0x34   :  { %1037 = vmatpush3.bf16.msra.mxu1 %v1334_v18  ;;  %1109 = vmatpush3.bf16.msra.mxu0 %v1334_v18  ;;  %v172_v5 = vsub.f32 %v1378_v39, %v171_v57  ;;  %v1442_v6 = vsub.f32 %v1340_v22, %v81_v26  ;;  %v1445_v7 = vsub.f32 %v1342_v23, %v84_v27  ;;  %v166_v10 = vand.u32 4294901760, %v165_v61 }
  0x35   :  { %1038 = vmatprep.subr.bf16.mxu1 %v1268_v0  ;;  %1110 = vmatprep.subr.bf16.mxu0 %v1268_v0  ;;  %v1126_v8 = vpack.c.bf16 %v157_v47, %v150_v46  ;;  %v141_v9 = vand.u32 4294901760, %v140_v60  ;;  %v179_v11 = vsub.f32 %v1401_v48, %v178_v62  ;;  %v186_v14 = vsub.f32 %v1403_v49, %v185_v63 }
  0x36   :  { %v1054_v15 = vpack.c.bf16 %v159_v4, %v152_v3  ;;  %v173_v16 = vand.u32 4294901760, %v172_v5  ;;  %v192_v17 = vand.u32 4294901760, %v1422_v58  ;;  %v199_v19 = vand.u32 4294901760, %v1424_v59 }
  0x37   :  { %v1458_v20 = vsub.f32 %v1354_v28, %v87_v34  ;;  %v1463_v22 = vsub.f32 %v1356_v29, %v90_v35  ;;  %v1129_v23 = vpack.c.bf16 %v171_v57, %v164_v53  ;;  %v180_v24 = vand.u32 4294901760, %v179_v11 }
  0x38   :  { %1040 = vmatpush3.bf16.msra.mxu1 %v1348_v25  ;;  %1112 = vmatpush3.bf16.msra.mxu0 %v1348_v25  ;;  %v187_v26 = vand.u32 4294901760, %v186_v14  ;;  %v206_v27 = vand.u32 4294901760, %v1442_v6  ;;  %v1057_v46 = vpack.c.bf16 %v173_v16, %v166_v10  ;;  %v193_v47 = vsub.f32 %v1422_v58, %v192_v17 }
  0x39   :  { %1041 = vmatprep.subr.bf16.mxu1 %v1268_v0  ;;  %1113 = vmatprep.subr.bf16.mxu0 %v1268_v0  ;;  %v200_v28 = vsub.f32 %v1424_v59, %v199_v19  ;;  %v213_v34 = vand.u32 4294901760, %v1445_v7  ;;  %v1474_v29 = vsub.f32 %v1370_v36, %v93_v40  ;;  %v1479_v35 = vsub.f32 %v1374_v37, %v96_v43 }
  0x3a   :  { %v1132_v53 = vpack.c.bf16 %v185_v63, %v178_v62  ;;  %v207_v55 = vsub.f32 %v1442_v6, %v206_v27  ;;  %v220_v56 = vand.u32 4294901760, %v1458_v20  ;;  %v194_v36 = vand.u32 4294901760, %v193_v47 }
  0x3b   :  { %v201_v40 = vand.u32 4294901760, %v200_v28  ;;  %v214_v57 = vsub.f32 %v1445_v7, %v213_v34  ;;  %v227_v37 = vand.u32 4294901760, %v1463_v22  ;;  %v1494_v43 = vsub.f32 %v1393_v44, %v99_v50 }
  0x3c   :  { %1043 = vmatpush3.bf16.msra.mxu1 %v1366_v33  ;;  %1115 = vmatpush3.bf16.msra.mxu0 %v1366_v33  ;;  %v1499_v60 = vsub.f32 %v1395_v45, %v102_v51  ;;  %v1135_v61 = vpack.c.bf16 %v199_v19, %v192_v17  ;;  %v208_v62 = vand.u32 4294901760, %v207_v55  ;;  %v221_v63 = vsub.f32 %v1458_v20, %v220_v56 }
  0x3d   :  { %1044 = vmatprep.subr.bf16.mxu1 %v1268_v0  ;;  %1116 = vmatprep.subr.bf16.mxu0 %v1268_v0  ;;  %v234_v3 = vand.u32 4294901760, %v1474_v29  ;;  %v1063_v4 = vpack.c.bf16 %v201_v40, %v194_v36  ;;  %v215_v5 = vand.u32 4294901760, %v214_v57  ;;  %v241_v44 = vand.u32 4294901760, %v1479_v35 }
  0x3e   :  { %v1138_v45 = vpack.c.bf16 %v213_v34, %v206_v27  ;;  %v222_v50 = vand.u32 4294901760, %v221_v63  ;;  %v1141_v16 = vpack.c.bf16 %v227_v37, %v220_v56  ;;  %v1081_v55 = vpack.c.bf16 %v1378_v39, %v1376_v38 }
  0x3f   :  { %v235_v51 = vsub.f32 %v1474_v29, %v234_v3  ;;  %v1066_v10 = vpack.c.bf16 %v215_v5, %v208_v62  ;;  %v242_v14 = vsub.f32 %v1479_v35, %v241_v44 }
  0x40   :  { %1046 = vmatpush3.bf16.msra.mxu1 %v1390_v42  ;;  %1118 = vmatpush3.bf16.msra.mxu0 %v1390_v42 }
  0x41   :  { %1047 = vmatprep.subr.bf16.mxu1 %v1268_v0  ;;  %1119 = vmatprep.subr.bf16.mxu0 %v1268_v0  ;;  %v236_v17 = vand.u32 4294901760, %v235_v51 }
  0x44   :  { %1049 = vmatpush3.bf16.msra.mxu1 %v1415_v54  ;;  %1121 = vmatpush3.bf16.msra.mxu0 %v1415_v54 }
  0x45   :  { %1050 = vmatprep.subr.bf16.mxu1 %v1268_v0  ;;  %1122 = vmatprep.subr.bf16.mxu0 %v1268_v0 }
  0x48   :  { %1052 = vmatpush3.bf16.msra.mxu1 %v1436_v2  ;;  %1124 = vmatpush3.bf16.msra.mxu0 %v1436_v2 }
  0x49   :  { %1053 = vmatprep.subr.bf16.mxu1 %v1268_v0  ;;  %1125 = vmatprep.subr.bf16.mxu0 %v1268_v0 }
  0x4b   :  { %852 = vmatmul.mubr.f32.vlgmr.msra.gmra.mrb[0].mxu1 %v141_v9  ;;  %957 = vmatmul.mubr.f32.vlgmr.msra.gmra.mrb[0].mxu0 %v139_v52  ;;  %v1060_v52 = vpack.c.bf16 %v187_v26, %v180_v24  ;;  %v248_v9 = vand.u32 4294901760, %v1494_v43 }
  0x4c   :  { %1055 = vmatpush3.bf16.msra.mxu1 %v1054_v15  ;;  %1127 = vmatpush3.bf16.msra.mxu0 %v1126_v8  ;;  %v228_v8 = vsub.f32 %v1463_v22, %v227_v37  ;;  %v255_v15 = vand.u32 4294901760, %v1499_v60 }
  0x4d   :  { %1056 = vmatprep.subr.bf16.mxu1 %v1268_v0  ;;  %1128 = vmatprep.subr.bf16.mxu0 %v1268_v0  ;;  %v249_v24 = vsub.f32 %v1494_v43, %v248_v9 }
  0x4e   :  { %886 = vmatprep.mubr.msk.f32.mxu1 %vm1269_vm0, %v1270_v1  ;;  %991 = vmatprep.mubr.msk.f32.mxu0 %vm1269_vm0, %v1270_v1  ;;  %v229_v11 = vand.u32 4294901760, %v228_v8  ;;  %v256_v26 = vsub.f32 %v1499_v60, %v255_v15 }
  0x4f   :  { %v250_v47 = vand.u32 4294901760, %v249_v24 }
  0x50   :  { %1058 = vmatpush3.bf16.msra.mxu1 %v1057_v46  ;;  %1130 = vmatpush3.bf16.msra.mxu0 %v1129_v23  ;;  %v1069_v19 = vpack.c.bf16 %v229_v11, %v222_v50  ;;  %v243_v23 = vand.u32 4294901760, %v242_v14  ;;  %v1144_v46 = vpack.c.bf16 %v241_v44, %v234_v3  ;;  %v257_v28 = vand.u32 4294901760, %v256_v26 }
  0x51   :  { %1059 = vmatprep.subr.bf16.mxu1 %v1268_v0  ;;  %1131 = vmatprep.subr.bf16.mxu0 %v1268_v0 }
  0x52   :  { %v1072_v27 = vpack.c.bf16 %v243_v23, %v236_v17  ;;  %v1075_v34 = vpack.c.bf16 %v257_v28, %v250_v47 }
  0x54   :  { %1061 = vmatpush3.bf16.msra.mxu1 %v1060_v52  ;;  %1133 = vmatpush3.bf16.msra.mxu0 %v1132_v53  ;;  %v1147_v52 = vpack.c.bf16 %v255_v15, %v248_v9  ;;  %v1078_v53 = vpack.c.bf16 %v1362_v32, %v1358_v30  ;;  %v1084_v30 = vpack.c.bf16 %v1403_v49, %v1401_v48 }
  0x55   :  { %1062 = vmatprep.subr.bf16.mxu1 %v1268_v0  ;;  %1134 = vmatprep.subr.bf16.mxu0 %v1268_v0 }
  0x58   :  { %1064 = vmatpush3.bf16.msra.mxu1 %v1063_v4  ;;  %1136 = vmatpush3.bf16.msra.mxu0 %v1135_v61 }
  0x59   :  { %1065 = vmatprep.subr.bf16.mxu1 %v1268_v0  ;;  %1137 = vmatprep.subr.bf16.mxu0 %v1268_v0 }
  0x5c   :  { %1067 = vmatpush3.bf16.msra.mxu1 %v1066_v10  ;;  %1139 = vmatpush3.bf16.msra.mxu0 %v1138_v45 }
  0x5d   :  { %1068 = vmatprep.subr.bf16.mxu1 %v1268_v0  ;;  %1140 = vmatprep.subr.bf16.mxu0 %v1268_v0 }
  0x60   :  { %1070 = vmatpush3.bf16.msra.mxu1 %v1069_v19  ;;  %1142 = vmatpush3.bf16.msra.mxu0 %v1141_v16 }
  0x61   :  { %1071 = vmatprep.subr.bf16.mxu1 %v1268_v0  ;;  %1143 = vmatprep.subr.bf16.mxu0 %v1268_v0 }
  0x64   :  { %1073 = vmatpush3.bf16.msra.mxu1 %v1072_v27  ;;  %1145 = vmatpush3.bf16.msra.mxu0 %v1144_v46 }
  0x65   :  { %1074 = vmatprep.subr.bf16.mxu1 %v1268_v0  ;;  %1146 = vmatprep.subr.bf16.mxu0 %v1268_v0 }
  0x68   :  { %1076 = vmatpush3.bf16.msra.mxu1 %v1075_v34  ;;  %1148 = vmatpush3.bf16.msra.mxu0 %v1147_v52 }
  0x69   :  { %1077 = vmatprep.subr.bf16.mxu1 %v1268_v0  ;;  %1149 = vmatprep.subr.bf16.mxu0 %v1268_v0 }
  0x6b   :  { %887 = vmatmul.mubr.f32.vlgmr.msra.gmra.mrb[0].mxu1 %v1360_v31  ;;  %992 = vmatmul.mubr.f32.vlgmr.msra.gmra.mrb[0].mxu0 %v1360_v31 }
  0x6c   :  { %1079 = vmatpush3.bf16.msra.mxu1 %v1078_v53  ;;  %1151 = vmatpush3.bf16.msra.mxu0 %v1324_v12  ;;  %v1087_v12 = vpack.c.bf16 %v1424_v59, %v1422_v58 }
  0x6d   :  { %1080 = vmatprep.subr.bf16.mxu1 %v1268_v0  ;;  %1152 = vmatprep.subr.bf16.mxu0 %v1268_v0 }
  0x6e   :  { %921 = vmatprep.mubr.msk.f32.mxu1 %vm1269_vm0, %v1270_v1  ;;  %1026 = vmatprep.mubr.msk.f32.mxu0 %vm1269_vm0, %v1270_v1  ;;  %v1090_v1 = vpack.c.bf16 %v1445_v7, %v1442_v6 }
  0x70   :  { %1082 = vmatpush3.bf16.msra.mxu1 %v1081_v55  ;;  %1154 = vmatpush3.bf16.msra.mxu0 %v1328_v13  ;;  %v1093_v13 = vpack.c.bf16 %v1463_v22, %v1458_v20 }
  0x71   :  { %1083 = vmatprep.subr.bf16.mxu1 %v1268_v0  ;;  %1155 = vmatprep.subr.bf16.mxu0 %v1268_v0 }
  0x74   :  { %1085 = vmatpush3.bf16.msra.mxu1 %v1084_v30  ;;  %1157 = vmatpush3.bf16.msra.mxu0 %v1334_v18  ;;  %v1096_v18 = vpack.c.bf16 %v1479_v35, %v1474_v29 }
  0x75   :  { %1086 = vmatprep.subr.bf16.mxu1 %v1268_v0  ;;  %1158 = vmatprep.subr.bf16.mxu0 %v1268_v0 }
  0x78   :  { %1088 = vmatpush3.bf16.msra.mxu1 %v1087_v12  ;;  %1160 = vmatpush3.bf16.msra.mxu0 %v1348_v25  ;;  %v1099_v25 = vpack.c.bf16 %v1499_v60, %v1494_v43 }
  0x79   :  { %1089 = vmatprep.subr.bf16.mxu1 %v1268_v0  ;;  %1161 = vmatprep.subr.bf16.mxu0 %v1268_v0 }
  0x7c   :  { %1091 = vmatpush3.bf16.msra.mxu1 %v1090_v1  ;;  %1163 = vmatpush3.bf16.msra.mxu0 %v1366_v33 }
  0x7d   :  { %1092 = vmatprep.subr.bf16.mxu1 %v1268_v0  ;;  %1164 = vmatprep.subr.bf16.mxu0 %v1268_v0 }
  0x80   :  { %1094 = vmatpush3.bf16.msra.mxu1 %v1093_v13  ;;  %1166 = vmatpush3.bf16.msra.mxu0 %v1390_v42 }
  0x81   :  { %1095 = vmatprep.subr.bf16.mxu1 %v1268_v0  ;;  %1167 = vmatprep.subr.bf16.mxu0 %v1268_v0 }
  0x84   :  { %1097 = vmatpush3.bf16.msra.mxu1 %v1096_v18  ;;  %1169 = vmatpush3.bf16.msra.mxu0 %v1415_v54 }
  0x85   :  { %1098 = vmatprep.subr.bf16.mxu1 %v1268_v0  ;;  %1170 = vmatprep.subr.bf16.mxu0 %v1268_v0 }
  0x88   :  { %1100 = vmatpush3.bf16.msra.mxu1 %v1099_v25  ;;  %1172 = vmatpush3.bf16.msra.mxu0 %v1436_v2 }
  0x8b   :  { %922 = vmatmul.mubr.f32.vlgmr.msra.gmra.mrb[0].mxu1 %v1382_v41  ;;  %1027 = vmatmul.mubr.f32.vlgmr.msra.gmra.mrb[0].mxu0 %v1360_v31 }
 0x15e   :  { %v398_v32 = vpop.f32.mrb[0].mxu1  ;;  %v693_v33 = vpop.f32.mrb[0].mxu0 }
 0x15f   :  { %v1173_v38 = vadd.f32 %v693_v33, %v398_v32  ;;  %v923_v39 = vpop.f32.mrb[1].mxu1  ;;  %v1028_v42 = vpop.f32.mrb[1].mxu0 }
 0x161   :  { %v697_v48 = vmax.f32 %v1173_v38, 1e-24 }
 0x163   :  { %1190 = vrsqrt.f32 %v697_v48 }
 0x16d   :  { %v1191_v49 = vpop.eup %1190 }
 0x16e   :  { %v699_v54 = vmul.f32 %v1191_v49, %v1336_v21 }
 0x170   :  { %700 = vst [vmem:[#allocation7] sm:$0xf] %v699_v54 }
 0x171   :  { %1247 = shalt.err (!%p1244_p6)
}
 0x172   :  { %s1248_s10 = scalar_lea.hbm %s1584_s2, 64 }
 0x173   :  { %p1249_p7 = scmp.ne.s32.totalorder %s1584_s2, %s1248_s10  ;;  %p1252_p8 = scmp.lt.u32.totalorder %s1248_s10, %s1584_s2 }
 0x175   :  { %p1254_p9 = pnand %p1252_p8, %p1249_p7 }
 0x177   :  { %1257 = shalt.err (!%p1254_p9)
}
 0x178   :  { %710 = dma.vmem_to_hbm [thread:$0]  %s708_s6, 64, %s1584_s2, [#allocation4]  }
 0x179   :  { %1262 = dma.done.wait [#allocation4], 64  }
 0x17a   :  { %1263 = vsyncadd [#allocation4], 4294967232 }
 0x17b   :  { %714 = vsyncpa [#allocation3], 1 }
 0x17c   :  { %715 = vsyncpa [#allocation6], 1 }
 0x17d   :  { %716 = vsyncpa [#allocation4], 1 }

</bundles_post_ra>
